<compile_context>
chip_gen: v5e
topology: v5e:2x2
jax: 0.10.0
libtpu: 0.0.40
codegen_flags: <defaults>
</compile_context>

<pallas_src>
import math

import jax
import jax.numpy as jnp
from jax.experimental import pallas as pl
from jax.experimental.pallas import tpu as pltpu

LN_EPS = 1e-5


# ----------------------------------------------------------------------------
# Kernel
# ----------------------------------------------------------------------------
def _patch_merging_kernel(x_ref, g_ref, b_ref, w_ref, o_ref):
    """x: (TH, 2, W2, 2C)   gamma/beta: (1, 4C)   w: (4C, O)   o: (TH*W2, O)."""
    th, _, w2, c2 = x_ref.shape
    m = th * w2
    c4 = 2 * c2

    x = x_ref[...]
    # Virtual 4C concat: lane-dim concat of the h-even / h-odd planes.  Each
    # plane's 2C lane is already [w-even C | w-odd C], so the 4C order matches
    # the module's reshape+permute: [h0w0 | h0w1 | h1w0 | h1w1].
    x4 = jnp.concatenate([x[:, 0], x[:, 1]], axis=-1).astype(jnp.float32)  # (th, W2, 4C)

    # One-pass LayerNorm statistics over the 4C axis (clamped variance).
    inv_n = 1.0 / c4
    mean = jnp.sum(x4, axis=-1, keepdims=True) * inv_n
    var = jnp.maximum(jnp.sum(x4 * x4, axis=-1, keepdims=True) * inv_n - mean * mean, 0.0)
    rstd = jax.lax.rsqrt(var + LN_EPS)

    g = g_ref[...].astype(jnp.float32)          # (1, 4C) -> broadcasts
    b = b_ref[...].astype(jnp.float32)
    y4 = (x4 - mean) * rstd * g + b             # (th, W2, 4C)

    # Single fused K=4C MXU matmul; weight kept in its stored dtype (pass bf16
    # parameters/activations for the bf16 MXU path).
    w = w_ref[...]
    o_ref[...] = jnp.dot(
        y4.reshape(m, c4).astype(w.dtype), w,
        preferred_element_type=jnp.float32).astype(o_ref.dtype)


# ----------------------------------------------------------------------------
# Generation-aware tiling helpers
# ----------------------------------------------------------------------------
_BUDGETS = None


def _tpu_budgets():
    """(activation_budget, max_pixel_rows_per_step, vmem_request_cap) derived
    from the per-core VMEM capacity (v5e/v6e: 128 MiB, v7x: 64 MiB)."""
    global _BUDGETS
    if _BUDGETS is None:
        cap = 64 * 1024 * 1024
        try:
            cap = int(getattr(pltpu.get_tpu_info(), "vmem_capacity_bytes", cap))
        except Exception:
            pass
        if cap >= 96 * 1024 * 1024:          # v5e / v6e class (128 MiB / core)
            act, rows = 56 * 1024 * 1024, 4096
        else:                                # v7x class (64 MiB / core)
            act, rows = 22 * 1024 * 1024, 1024
        _BUDGETS = (act, rows, int(cap * 0.85))
    return _BUDGETS


def _round_up(x, m):
    return -(-x // m) * m


def _choose_block_rows(bh2, w2, per_row_bytes, act_budget, max_pixel_rows):
    """Pick TH (bh2-rows per grid step).  TH*W2 must be a multiple of 8 unless
    TH == bh2 (full-dim exception); grid is ceil-div with a masked tail."""
    gran = 8 // math.gcd(w2, 8)                  # TH granule for 8-aligned tiles
    cap_rows = min(max(act_budget // max(per_row_bytes, 1), w2), max_pixel_rows)
    cap_th = max((cap_rows // w2) // gran * gran, gran)
    th = min(cap_th, bh2)

    # Prefer >=2 grid steps (v7x megacore sharding; per-step cost is ~0.35us).
    if th >= bh2 and bh2 > gran:
        cand = _round_up(-(-bh2 // 2), gran)
        if cand < bh2:
            th = cand

    # Prefer an even number of steps (balanced across v7x's two TensorCores).
    n = -(-bh2 // th)
    if n > 1 and n % 2 == 1:
        cand = _round_up(-(-bh2 // (n + 1)), gran)
        if gran <= cand <= min(cap_th, th) and (-(-bh2 // cand)) % 2 == 0:
            th = cand
    return th


def _vmem_limit_bytes(tile_m, c4, o_dim, in_bytes, out_bytes, w_nbytes, vmem_cap):
    need = (2 * tile_m * c4 * in_bytes          # double-buffered input blocks
            + 2 * tile_m * o_dim * out_bytes    # double-buffered output blocks
            + tile_m * (8 * c4 + 4 * o_dim)     # f32 temporaries + f32 matmul result
            + w_nbytes + 8 * c4 * 4             # single-buffered weight + gamma/beta
            + (2 << 20))                        # Mosaic internal scratch headroom
    return int(min(max(int(1.5 * need), 32 * 1024 * 1024), vmem_cap))


# ----------------------------------------------------------------------------
# Wrapper
# ----------------------------------------------------------------------------
@jax.jit
def patch_merging(x, gamma, beta, w):
    """x: (B, H, W, C); gamma/beta: (4C,); w: (4C, o_dim) -> (B, ceil(H/2), ceil(W/2), o_dim)."""
    B, H, W, C = x.shape
    c4 = 4 * C
    o_dim = w.shape[1]

    # Pad bottom/right so H, W are even (== F.pad(x, (0,0,0,W%2,0,H%2))).
    if (H % 2) or (W % 2):
        x = jnp.pad(x, ((0, 0), (0, H % 2), (0, W % 2), (0, 0)))
    _, Hp, Wp, _ = x.shape
    H2, W2 = Hp // 2, Wp // 2
    bh2 = B * H2
    n_pix = bh2 * W2
    c2 = 2 * C

    # Free (row-major) reshapes: no extra HBM traffic.
    xr = x.reshape(bh2, 2, W2, c2)       # dim 1 selects the even/odd input row
    g2 = gamma.reshape(1, c4)
    b2 = beta.reshape(1, c4)

    in_bytes = jnp.dtype(x.dtype).itemsize
    out_dtype = x.dtype
    out_bytes = jnp.dtype(out_dtype).itemsize
    w_nbytes = w.size * jnp.dtype(w.dtype).itemsize

    act_budget, max_pixel_rows, vmem_cap = _tpu_budgets()
    # Leave room inside the budget for the single-buffered weight/params.
    act_budget = max(act_budget - w_nbytes - 8 * c4 * 4, act_budget // 4)

    per_row = 2 * c4 * in_bytes + 2 * o_dim * out_bytes + 8 * c4 + 4 * o_dim
    th = _choose_block_rows(bh2, W2, per_row, act_budget, max_pixel_rows)
    tile_m = th * W2
    grid = (pl.cdiv(bh2, th),)

    cost = pl.CostEstimate(
        flops=2 * n_pix * c4 * o_dim + 10 * n_pix * c4,
        transcendentals=n_pix,
        bytes_accessed=n_pix * (c4 * in_bytes + o_dim * out_bytes) + w_nbytes,
    )

    out2d = pl.pallas_call(
        _patch_merging_kernel,
        out_shape=jax.ShapeDtypeStruct((n_pix, o_dim), out_dtype),
        grid=grid,
        in_specs=[
            pl.BlockSpec((th, 2, W2, c2), lambda i: (i, 0, 0, 0)),
            # grid-invariant operands: single-buffered
            pl.BlockSpec((1, c4), lambda i: (0, 0), pipeline_mode=pl.Buffered(1)),
            pl.BlockSpec((1, c4), lambda i: (0, 0), pipeline_mode=pl.Buffered(1)),
            pl.BlockSpec((c4, o_dim), lambda i: (0, 0), pipeline_mode=pl.Buffered(1)),
        ],
        out_specs=pl.BlockSpec((tile_m, o_dim), lambda i: (i, 0)),
        compiler_params=pltpu.CompilerParams(
            dimension_semantics=("parallel",),
            vmem_limit_bytes=_vmem_limit_bytes(
                tile_m, c4, o_dim, in_bytes, out_bytes, w_nbytes, vmem_cap),
        ),
        cost_estimate=cost,
    )(xr, g2, b2, w)

    return out2d.reshape(B, H2, W2, o_dim)


def convert_canonical_swin_params(gamma, beta, w, C):
    """Permute params trained with the canonical Swin torch.cat([x0,x1,x2,x3])
    4C ordering into this module's reshape+permute ordering."""
    blk = jnp.arange(4)
    src_block = (blk % 2) * 2 + (blk // 2)       # (hp, wp) block position in cat order
    perm = (src_block[:, None] * C + jnp.arange(C)[None, :]).reshape(-1)
    return gamma[perm], beta[perm], w[perm, :]


# ----------------------------------------------------------------------------
# Reference + tests
# ----------------------------------------------------------------------------
def _reference(x, gamma, beta, w):
    """Pure-JAX mirror of the PyTorch PatchMerging.forward (same reshape+permute)."""
    B, H, W, C = x.shape
    x = jnp.pad(x, ((0, 0), (0, H % 2), (0, W % 2), (0, 0)))
    _, Hp, Wp, _ = x.shape
    x = x.reshape(B, Hp // 2, 2, Wp // 2, 2, C)
    x = jnp.transpose(x, (0, 1, 3, 2, 4, 5)).reshape(B, Hp // 2, Wp // 2, 4 * C)
    mean = jnp.mean(x, axis=-1, keepdims=True)
    var = jnp.mean((x - mean) ** 2, axis=-1, keepdims=True)
    y = (x - mean) / jnp.sqrt(var + LN_EPS) * gamma + beta
    return jnp.einsum("bhwc,cd->bhwd", y, w, precision=jax.lax.Precision.HIGHEST)


def _run_case(case_idx, B, H, W, C, o_dim, dtype=jnp.float32, tol=2e-3):
    key = jax.random.fold_in(jax.random.PRNGKey(0), case_idx)
    kx, kw, kg, kb = jax.random.split(key, 4)
    x = jax.random.normal(kx, (B, H, W, C), dtype=jnp.float32)
    gamma = 1.0 + 0.1 * jax.random.normal(kg, (4 * C,), dtype=jnp.float32)
    beta = 0.1 * jax.random.normal(kb, (4 * C,), dtype=jnp.float32)
    w_pt = jax.random.normal(kw, (o_dim, 4 * C), dtype=jnp.float32) * 0.02  # torch (out, in)
    w = w_pt.T                                                              # kernel uses (4C, o_dim)

    xk, wk = x.astype(dtype), w.astype(dtype)
    out = jax.block_until_ready(patch_merging(xk, gamma, beta, wk))
    ref = _reference(xk.astype(jnp.float32), gamma, beta, wk.astype(jnp.float32))

    hp, wp = H + H % 2, W + W % 2
    assert out.shape == (B, hp // 2, wp // 2, o_dim), out.shape
    assert out.dtype == jnp.dtype(dtype)
    err = float(jnp.max(jnp.abs(out.astype(jnp.float32) - ref)))
    assert err < tol, (B, H, W, C, o_dim, str(dtype), err)


if __name__ == "__main__":
    _run_case(0, B=2, H=16, W=16, C=4, o_dim=8)        # default o_dim = 2*dim
    _run_case(1, B=1, H=15, W=16, C=4, o_dim=16)       # odd H -> semantic pad path
    _run_case(2, B=1, H=17, W=13, C=8, o_dim=32)       # odd H & W + ragged last grid step
    _run_case(3, B=2, H=16, W=16, C=64, o_dim=128)     # lane-dense (4C=256, o=128)
    _run_case(4, B=2, H=16, W=16, C=64, o_dim=128,
              dtype=jnp.bfloat16, tol=5e-2)            # bf16 activations + weights
    print("KERNEL_OK")
</pallas_src>

<mosaic_0001>
module attributes {stable_mosaic.version = 11 : i64} {
  func.func @_patch_merging_kernel(%arg0: i32, %arg1: memref<8x2x8x8xf32, #tpu.memory_space<vmem>>, %arg2: memref<1x16xf32, #tpu.memory_space<vmem>>, %arg3: memref<1x16xf32, #tpu.memory_space<vmem>>, %arg4: memref<16x8xf32, #tpu.memory_space<vmem>>, %arg5: memref<64x8xf32, #tpu.memory_space<vmem>>) attributes {dimension_semantics = [#tpu.dimension_semantics<parallel>], iteration_bounds = array<i64: 2>, scalar_prefetch = 0 : i64, scratch_operands = 0 : i64, tpu.core_type = #tpu.core_type<tc>, window_params = [{transform_indices = @transform_0, window_bounds = array<i64: 8, 2, 8, 8>}, {pipeline_mode = #tpu.pipeline_mode<synchronous>, transform_indices = @transform_1, window_bounds = array<i64: 1, 16>}, {pipeline_mode = #tpu.pipeline_mode<synchronous>, transform_indices = @transform_2, window_bounds = array<i64: 1, 16>}, {pipeline_mode = #tpu.pipeline_mode<synchronous>, transform_indices = @transform_3, window_bounds = array<i64: 16, 8>}, {transform_indices = @transform_4, window_bounds = array<i64: 64, 8>}]} {
    %c0 = arith.constant 0 : index
    %c0_0 = arith.constant 0 : index
    %c0_1 = arith.constant 0 : index
    %c0_2 = arith.constant 0 : index
    %0 = vector.load %arg1[%c0, %c0_0, %c0_1, %c0_2] : memref<8x2x8x8xf32, #tpu.memory_space<vmem>>, vector<8x2x8x8xf32>
    %1 = vector.extract_strided_slice %0 {offsets = [0, 0, 0, 0], sizes = [8, 1, 8, 8], strides = [1, 1, 1, 1]} : vector<8x2x8x8xf32> to vector<8x1x8x8xf32>
    %2 = vector.shape_cast %1 : vector<8x1x8x8xf32> to vector<8x8x8xf32>
    %3 = vector.extract_strided_slice %0 {offsets = [0, 1, 0, 0], sizes = [8, 1, 8, 8], strides = [1, 1, 1, 1]} : vector<8x2x8x8xf32> to vector<8x1x8x8xf32>
    %4 = vector.shape_cast %3 : vector<8x1x8x8xf32> to vector<8x8x8xf32>
    %5 = tpu.concatenate %2, %4 in 2 : vector<8x8x8xf32>, vector<8x8x8xf32> -> vector<8x8x16xf32>
    %cst = arith.constant dense<0.000000e+00> : vector<8x8xf32>
    %6 = vector.multi_reduction <add>, %5, %cst [2] : vector<8x8x16xf32> to vector<8x8xf32>
    %7 = vector.shape_cast %6 : vector<8x8xf32> to vector<8x8x1xf32>
    %cst_3 = arith.constant 6.250000e-02 : f32
    %8 = vector.broadcast %cst_3 : f32 to vector<8x8x1xf32>
    %9 = arith.mulf %7, %8 : vector<8x8x1xf32>
    %10 = arith.mulf %5, %5 : vector<8x8x16xf32>
    %cst_4 = arith.constant dense<0.000000e+00> : vector<8x8xf32>
    %11 = vector.multi_reduction <add>, %10, %cst_4 [2] : vector<8x8x16xf32> to vector<8x8xf32>
    %12 = vector.shape_cast %11 : vector<8x8xf32> to vector<8x8x1xf32>
    %cst_5 = arith.constant 6.250000e-02 : f32
    %13 = vector.broadcast %cst_5 : f32 to vector<8x8x1xf32>
    %14 = arith.mulf %12, %13 : vector<8x8x1xf32>
    %15 = arith.mulf %9, %9 : vector<8x8x1xf32>
    %16 = arith.subf %14, %15 : vector<8x8x1xf32>
    %cst_6 = arith.constant 0.000000e+00 : f32
    %17 = vector.broadcast %cst_6 : f32 to vector<8x8x1xf32>
    %18 = arith.maximumf %16, %17 : vector<8x8x1xf32>
    %cst_7 = arith.constant 9.99999974E-6 : f32
    %19 = vector.broadcast %cst_7 : f32 to vector<8x8x1xf32>
    %20 = arith.addf %18, %19 : vector<8x8x1xf32>
    %21 = math.rsqrt %20 : vector<8x8x1xf32>
    %c0_8 = arith.constant 0 : index
    %c0_9 = arith.constant 0 : index
    %22 = vector.load %arg2[%c0_8, %c0_9] : memref<1x16xf32, #tpu.memory_space<vmem>>, vector<1x16xf32>
    %c0_10 = arith.constant 0 : index
    %c0_11 = arith.constant 0 : index
    %23 = vector.load %arg3[%c0_10, %c0_11] : memref<1x16xf32, #tpu.memory_space<vmem>>, vector<1x16xf32>
    %24 = vector.broadcast %9 : vector<8x8x1xf32> to vector<8x8x16xf32>
    %25 = arith.subf %5, %24 : vector<8x8x16xf32>
    %26 = vector.broadcast %21 : vector<8x8x1xf32> to vector<8x8x16xf32>
    %27 = arith.mulf %25, %26 : vector<8x8x16xf32>
    %28 = vector.shape_cast %22 : vector<1x16xf32> to vector<1x1x16xf32>
    %29 = vector.broadcast %28 : vector<1x1x16xf32> to vector<8x8x16xf32>
    %30 = arith.mulf %27, %29 : vector<8x8x16xf32>
    %31 = vector.shape_cast %23 : vector<1x16xf32> to vector<1x1x16xf32>
    %32 = vector.broadcast %31 : vector<1x1x16xf32> to vector<8x8x16xf32>
    %33 = arith.addf %30, %32 : vector<8x8x16xf32>
    %c0_12 = arith.constant 0 : index
    %c0_13 = arith.constant 0 : index
    %34 = vector.load %arg4[%c0_12, %c0_13] : memref<16x8xf32, #tpu.memory_space<vmem>>, vector<16x8xf32>
    %35 = vector.shape_cast %33 : vector<8x8x16xf32> to vector<64x16xf32>
    %cst_14 = arith.constant dense<0.000000e+00> : vector<64x8xf32>
    %36 = tpu.matmul %35, %34, %cst_14 {dimension_numbers = #tpu.dot_dimension_numbers<[1], [0], [0], [1], [0, 0, 1, 1], [], []>} : vector<64x16xf32>, vector<16x8xf32>, vector<64x8xf32> -> vector<64x8xf32>
    %c0_15 = arith.constant 0 : index
    %c0_16 = arith.constant 0 : index
    %37 = vector.load %arg5[%c0_15, %c0_16] : memref<64x8xf32, #tpu.memory_space<vmem>>, vector<64x8xf32>
    tpu.vector_store %arg5[%c0_15, %c0_16], %36 {strides = array<i32>} : memref<64x8xf32, #tpu.memory_space<vmem>>, vector<64x8xf32>,
    return
  }
  func.func @transform_0(%arg0: i32) -> (i32, i32, i32, i32) {
    %c0_i32 = arith.constant 0 : i32
    %c0_i32_0 = arith.constant 0 : i32
    %c0_i32_1 = arith.constant 0 : i32
    %c0_i32_2 = arith.constant 0 : i32
    return %arg0, %c0_i32, %c0_i32_0, %c0_i32_1 : i32, i32, i32, i32
  }
  func.func @transform_1(%arg0: i32) -> (i32, i32) {
    %c0_i32 = arith.constant 0 : i32
    %c0_i32_0 = arith.constant 0 : i32
    %c0_i32_1 = arith.constant 0 : i32
    return %c0_i32, %c0_i32_0 : i32, i32
  }
  func.func @transform_2(%arg0: i32) -> (i32, i32) {
    %c0_i32 = arith.constant 0 : i32
    %c0_i32_0 = arith.constant 0 : i32
    %c0_i32_1 = arith.constant 0 : i32
    return %c0_i32, %c0_i32_0 : i32, i32
  }
  func.func @transform_3(%arg0: i32) -> (i32, i32) {
    %c0_i32 = arith.constant 0 : i32
    %c0_i32_0 = arith.constant 0 : i32
    %c0_i32_1 = arith.constant 0 : i32
    return %c0_i32, %c0_i32_0 : i32, i32
  }
  func.func @transform_4(%arg0: i32) -> (i32, i32) {
    %c0_i32 = arith.constant 0 : i32
    %c0_i32_0 = arith.constant 0 : i32
    return %arg0, %c0_i32 : i32, i32
  }
}

</mosaic_0001>

<bundles_post_ra>
// kernel: patch_merging.1
= control target key start
LH: loop header
LB: loop body
LE: loop exit
PB: predicated region body
PF: predicated region fallthrough
CT: control target
= control target key end

     0   :  { %9 = vsyncpa [#allocation3], 0  ;;  %s1194_s0 = inlined_call_operand.vmem [shape: f32[16,2,8,8], index: 0, kind: input, shape index: {}]   ;;  %s1195_s1 = inlined_call_operand.vmem [shape: f32[1,16], index: 1, kind: input, shape index: {}]   ;;  %s1196_s2 = inlined_call_operand.vmem [shape: f32[1,16], index: 2, kind: input, shape index: {}]   ;;  %s1197_s3 = inlined_call_operand.vmem [shape: f32[16,8], index: 3, kind: input, shape index: {}]   ;;  %s1198_s4 = inlined_call_operand.hbm [shape: f32[128,8], index: 4, kind: output, shape index: {}]  }
   0x1   :  { %11 = vsyncpa [#allocation3 + $0x1], 0  ;;  %s816_s15 = smov 0   ;;  %s818_s16 = smov 0  }
   0x2   :  { %s820_s17 = smov 0   ;;  %s822_s18 = smov 0  }
   0x3 LB: > { %s837_s19 = sadd.s32 4294967295, %s787_s18   ;;  %s637_s20 = sadd.s32 4294967294, %s787_s18   ;;  %s787_s18 = sphi %s822_s18, %s1208_s18   ;;  %s783_s17 = sphi %s820_s17, %s1207_s17   ;;  %s779_s16 = sphi %s818_s16, %s1206_s16   ;;  %s775_s15 = sphi %s816_s15, %s1205_s15  }
   0x4   : > { %s841_s21 = sadd.s32 1, %s787_s18   ;;  %s113_s22 = sadd.s32 1, %s783_s17 }
   0x5   : > { %s110_s23 = ssub.s32 %s787_s18, %s841_s21  ;;  %p123_p0 = scmp.ne.s32.totalorder %s783_s17, %s779_s16 }
   0x6   : > { %p111_p1 = scmp.eq.s32.totalorder %s110_s23, 0  ;;  %p124_p2 = scmp.eq.s32.totalorder %s837_s19, 1 }
   0x7   : > { %p129_p3 = scmp.ne.s32.totalorder %s779_s16, %s775_s15  ;;  %p130_p4 = scmp.eq.s32.totalorder %s637_s20, 1 }
   0x8   : > { %s852_s24 = scalar_select %p111_p1, %s783_s17, %s113_s22  }
   0x9   : > { %p854_p5 = por %p124_p2, %p123_p0  ;;  %p858_p6 = por %p130_p4, %p129_p3 }
   0xa   : > { %p640_p7 = scmp.ge.s32.totalorder %s787_s18, 1  ;;  %p167_p8 = scmp.lt.s32.totalorder %s787_s18, 3 }
   0xc   : > { %p168_p9 = pnand %p640_p7, %p167_p8 }
   0xd   : > { %s642_s27 = sshll.u32 (!%p168_p9), %s837_s19, 3  ;;  %s789_s6 = smov (!%p168_p9), 8  }
   0xe   : > { %171 = sbr.rel (%p168_p9) target bundleno = 464 (0x1d0), region = 36  ;;  %p195_p10 = scmp.lt.s32.totalorder (!%p168_p9), %s642_s27, 15 }
   0xf   : > { %s191_s20 = sand.u32 (!%p168_p9), 1, %s779_s16   ;;  %s745_s12 = scalar_lea.hbm (!%p168_p9), %s1198_s4, 128 }
  0x10   : > { %s641_s22 = sshll.u32 (!%p168_p9), %s191_s20, 6 }
  0x11   : > { %s193_s23 = scalar_lea.vmem (!%p168_p9), [#allocation2], %s641_s22 }
  0x13   : > { %s1210_s27 = smov (!%p195_p10, %s642_s27), 15  ;;  %vm250_vm0 = vcmask 64512   ;;  %vm259_vm1 = vcmask 130048  }
  0x14   : > { %s658_s28 = sshll.u32 %s1210_s27, 4  ;;  %s659_s27 = sshll.u32 %s837_s19, 6 }
  0x15   : > { %s868_s5 = scalar_lea.vmem %s1194_s0, %s658_s28  ;;  %s571_s30 = scalar_lea.hbm %s1198_s4, %s659_s27 }
  0x16   : > { %v213_v0 = vld [vmem:[%s868_s5 + $0x58] sm:$0xff]  ;;  %v211_v1 = vld [vmem:[%s868_s5 + $0x48] sm:$0xff]  ;;  %v212_v8 = vld [vmem:[%s868_s5 + $0x50] sm:$0xff]  ;;  %s574_s7 = sshll.u32 %s571_s30, 4  ;;  %s560_s19 = scalar_lea.sflag [#allocation3], %s191_s20  ;;  %s575_s7 = int_to_ptr.hbm [resolvable:$true] %s574_s7 }
  0x17   : > { %236 = vrot.lane.b32.xlu2 %v213_v0, %s789_s6  ;;  %234 = vrot.lane.b32.xlu0 %v211_v1, %s789_s6  ;;  %v203_v2 = vld [vmem:[%s868_s5 + $0x8] sm:$0xff]  ;;  %v217_v4 = vld [vmem:[%s868_s5 + $0x78] sm:$0xff]  ;;  %s739_s8 = sshra.s32 %s575_s7, 4  ;;  %s740_s8 = int_to_ptr.hbm [resolvable:$true] %s739_s8 }
  0x18   : > { %226 = vrot.lane.b32.xlu1 %v203_v2, %s789_s6  ;;  %v215_v3 = vld [vmem:[%s868_s5 + $0x68] sm:$0xff]  ;;  %v205_v6 = vld [vmem:[%s868_s5 + $0x18] sm:$0xff]  ;;  %v210_v12 = vld [vmem:[%s868_s5 + $0x40] sm:$0xff]  ;;  %s741_s9 = scalar_lea.hbm %s740_s8, 64  ;;  %p746_p0 = scmp.lt.s32.totalorder %s740_s8, %s1198_s4 }
  0x19   : > { %v207_v5 = vld [vmem:[%s868_s5 + $0x28] sm:$0xff]  ;;  %v209_v7 = vld [vmem:[%s868_s5 + $0x38] sm:$0xff]  ;;  %v202_v17 = vld [vmem:[%s868_s5] sm:$0xff]  ;;  %p742_p11 = scmp.ne.s32.totalorder %s740_s8, %s741_s9  ;;  %p747_p1 = scmp.lt.s32.totalorder %s745_s12, %s741_s9 }
  0x1a   : > { %v214_v19 = vld [vmem:[%s868_s5 + $0x60] sm:$0xff]  ;;  %v216_v26 = vld [vmem:[%s868_s5 + $0x70] sm:$0xff] }
  0x1b   : > { %v206_v24 = vld [vmem:[%s868_s5 + $0x20] sm:$0xff]  ;;  %v204_v30 = vld [vmem:[%s868_s5 + $0x10] sm:$0xff]  ;;  %p743_p12 = pnand %p742_p11, %p854_p5  ;;  %p748_p2 = por %p747_p1, %p746_p0 }
  0x1c   : > { %v208_v44 = vld [vmem:[%s868_s5 + $0x30] sm:$0xff]  ;;  %s572_s5 = sshll.u32 %s193_s23, 4  ;;  %s573_s5 = int_to_ptr.vmem [resolvable:$true] %s572_s5 }
  0x1d   : > { %p744_p13 = pneg %p743_p12 }
  0x1f   : > { %238 = vrot.lane.b32.xlu0 %v215_v3, %s789_s6  ;;  %240 = vrot.lane.b32.xlu2 %v217_v4, %s789_s6  ;;  %p749_p3 = pnand %p748_p2, %p744_p13 }
  0x20   : > { %230 = vrot.lane.b32.xlu1 %v207_v5, %s789_s6 }
  0x27   : > { %228 = vrot.lane.b32.xlu0 %v205_v6, %s789_s6 }
  0x28   : > { %232 = vrot.lane.b32.xlu1 %v209_v7, %s789_s6 }
  0x71   : > { %v237_v9 = vpop.permute.xlu2 %236 }
  0x72   : > { %v888_v10 = vsel %vm250_vm0, %v212_v8, %v237_v9 }
  0x73   : > { %v275_v11 = vsel %vm259_vm1, %v888_v10, 0.0  ;;  %v297_v46 = vmul.f32 %v888_v10, %v888_v10 }
  0x74   : > { %276 = vadd.xlane.f32.xlu1 %v275_v11 }
  0x75   : > { %v315_v50 = vsel %vm259_vm1, %v297_v46, 0.0 }
  0x79   : > { %v241_v27 = vpop.permute.xlu2 %240 }
  0x7a   : > { %v916_v29 = vsel %vm250_vm0, %v216_v26, %v241_v27 }
  0x7b   : > { %v281_v34 = vsel %vm259_vm1, %v916_v29, 0.0  ;;  %v299_v43 = vmul.f32 %v916_v29, %v916_v29 }
  0x7d   : > { %v321_v49 = vsel %vm259_vm1, %v299_v43, 0.0 }
  0x89   : > { %v235_v13 = vpop.permute.xlu0 %234 }
  0x8a   : > { %v894_v14 = vsel %vm250_vm0, %v210_v12, %v235_v13  ;;  %v227_v15 = vpop.permute.xlu1 %226 }
  0x8b   : > { %v272_v16 = vsel %vm259_vm1, %v894_v14, 0.0  ;;  %v900_v18 = vsel %vm250_vm0, %v202_v17, %v227_v15  ;;  %v296_v36 = vmul.f32 %v894_v14, %v894_v14  ;;  %v485_v15 = vld [vmem:[%s1197_s3 + $0x8] sm:$0xff] }
  0x8c   : > { %273 = vadd.xlane.f32.xlu2 %v272_v16  ;;  %v260_v21 = vsel %vm259_vm1, %v900_v18, 0.0  ;;  %v292_v37 = vmul.f32 %v900_v18, %v900_v18  ;;  %524 = vmatpush.msra.mxu0 %v485_v15 }
  0x8d   : > { %v312_v39 = vsel %vm259_vm1, %v296_v36, 0.0  ;;  %661 = vmatpush.msra.mxu2 %v485_v15  ;;  %662 = vmatpush.msra.mxu3 %v485_v15 }
  0x8e   : > { %v300_v40 = vsel %vm259_vm1, %v292_v37, 0.0  ;;  %660 = vmatpush.msra.mxu1 %v485_v15 }
  0x91   : > { %v239_v20 = vpop.permute.xlu0 %238 }
  0x92   : > { %v906_v22 = vsel %vm250_vm0, %v214_v19, %v239_v20  ;;  %v231_v25 = vpop.permute.xlu1 %230  ;;  %v484_v20 = vld [vmem:[%s1197_s3] sm:$0xff] }
  0x93   : > { %v278_v23 = vsel %vm259_vm1, %v906_v22, 0.0  ;;  %v913_v28 = vsel %vm250_vm0, %v206_v24, %v231_v25  ;;  %v298_v38 = vmul.f32 %v906_v22, %v906_v22  ;;  %525 = vmatpush.msra.mxu0 %v484_v20  ;;  %664 = vmatpush.msra.mxu2 %v484_v20 }
  0x94   : > { %279 = vadd.xlane.f32.xlu0 %v278_v23  ;;  %261 = vadd.xlane.f32.xlu2 %v260_v21  ;;  %v266_v32 = vsel %vm259_vm1, %v913_v28, 0.0  ;;  %v294_v42 = vmul.f32 %v913_v28, %v913_v28 }
  0x95   : > { %v318_v41 = vsel %vm259_vm1, %v298_v38, 0.0  ;;  %665 = vmatpush.msra.mxu3 %v484_v20  ;;  %663 = vmatpush.msra.mxu1 %v484_v20 }
  0x96   : > { %v306_v48 = vsel %vm259_vm1, %v294_v42, 0.0 }
  0x99   : > { %v229_v31 = vpop.permute.xlu0 %228 }
  0x9a   : > { %v922_v33 = vsel %vm250_vm0, %v204_v30, %v229_v31  ;;  %v233_v45 = vpop.permute.xlu1 %232 }
  0x9b   : > { %v263_v35 = vsel %vm259_vm1, %v922_v33, 0.0  ;;  %v945_v47 = vsel %vm250_vm0, %v208_v44, %v233_v45  ;;  %v293_v52 = vmul.f32 %v922_v33, %v922_v33 }
  0x9c   : > { %264 = vadd.xlane.f32.xlu1 %v263_v35  ;;  %267 = vadd.xlane.f32.xlu0 %v266_v32  ;;  %v295_v51 = vmul.f32 %v945_v47, %v945_v47  ;;  %v269_v54 = vsel %vm259_vm1, %v945_v47, 0.0 }
  0x9d   : > { %282 = vadd.xlane.f32.xlu2 %v281_v34  ;;  %v303_v55 = vsel %vm259_vm1, %v293_v52, 0.0 }
  0x9e   : > { %v309_v53 = vsel %vm259_vm1, %v295_v51, 0.0 }
  0xa4   : > { %313 = vadd.xlane.f32.xlu1 %v312_v39  ;;  %301 = vadd.xlane.f32.xlu0 %v300_v40 }
  0xa5   : > { %319 = vadd.xlane.f32.xlu2 %v318_v41 }
  0xac   : > { %307 = vadd.xlane.f32.xlu1 %v306_v48  ;;  %322 = vadd.xlane.f32.xlu0 %v321_v49 }
  0xad   : > { %316 = vadd.xlane.f32.xlu2 %v315_v50 }
  0xb4   : > { %304 = vadd.xlane.f32.xlu0 %v303_v55  ;;  %310 = vadd.xlane.f32.xlu1 %v309_v53 }
  0xb5   : > { %270 = vadd.xlane.f32.xlu2 %v269_v54 }
  0xe7   : > { %v277_v57 = vpop.xlane.xlu1 %276 }
  0xe8   : > { %v980_v24 = vmul.f32 0.0625, %v277_v57 }
  0xea   : > { %v337_v34 = vmul.f32 %v980_v24, %v980_v24 }
  0xff   : > { %v274_v56 = vpop.xlane.xlu2 %273 }
 0x100   : > { %v960_v63 = vmul.f32 0.0625, %v274_v56 }
 0x102   : > { %v336_v4 = vmul.f32 %v960_v63, %v960_v63  ;;  %v450_v49 = vsub.f32 %v894_v14, %v960_v63 }
 0x107   : > { %v280_v58 = vpop.xlane.xlu0 %279  ;;  %v262_v59 = vpop.xlane.xlu2 %261 }
 0x108   : > { %v962_v0 = vmul.f32 0.0625, %v262_v59  ;;  %v964_v1 = vmul.f32 0.0625, %v280_v58 }
 0x10a   : > { %v332_v5 = vmul.f32 %v962_v0, %v962_v0  ;;  %v338_v9 = vmul.f32 %v964_v1, %v964_v1  ;;  %v452_v52 = vsub.f32 %v906_v22, %v964_v1  ;;  %v446_v57 = vsub.f32 %v900_v18, %v962_v0 }
 0x10f   : > { %v268_v60 = vpop.xlane.xlu0 %267  ;;  %v958_v61 = vpop.xlane.xlu1 %264 }
 0x110   : > { %v283_v62 = vpop.xlane.xlu2 %282  ;;  %v982_v25 = vmul.f32 0.0625, %v268_v60  ;;  %v1018_v58 = vmul.f32 0.0625, %v958_v61 }
 0x111   : > { %v978_v21 = vmul.f32 0.0625, %v283_v62 }
 0x112   : > { %v334_v35 = vmul.f32 %v982_v25, %v982_v25  ;;  %v333_v18 = vmul.f32 %v1018_v58, %v1018_v58 }
 0x113   : > { %v339_v38 = vmul.f32 %v978_v21, %v978_v21  ;;  %v453_v61 = vsub.f32 %v916_v29, %v978_v21 }
 0x117   : > { %v314_v2 = vpop.xlane.xlu1 %313  ;;  %v302_v3 = vpop.xlane.xlu0 %301 }
 0x118   : > { %v328_v6 = vmul.f32 0.0625, %v314_v2  ;;  %v324_v7 = vmul.f32 0.0625, %v302_v3  ;;  %v320_v8 = vpop.xlane.xlu2 %319  ;;  %v448_v2 = vsub.f32 %v913_v28, %v982_v25 }
 0x119   : > { %v330_v11 = vmul.f32 0.0625, %v320_v8 }
 0x11a   : > { %v344_v12 = vsub.f32 %v328_v6, %v336_v4  ;;  %v340_v13 = vsub.f32 %v324_v7, %v332_v5 }
 0x11b   : > { %v346_v16 = vsub.f32 %v330_v11, %v338_v9 }
 0x11c   : > { %v352_v17 = vmax.f32 %v344_v12, 0.0  ;;  %v348_v19 = vmax.f32 %v340_v13, 0.0 }
 0x11d   : > { %v354_v23 = vmax.f32 %v346_v16, 0.0 }
 0x11e   : > { %v984_v26 = vadd.f32 1e-05, %v352_v17  ;;  %v986_v27 = vadd.f32 1e-05, %v348_v19 }
 0x11f   : > { %v988_v30 = vadd.f32 1e-05, %v354_v23  ;;  %v308_v31 = vpop.xlane.xlu1 %307  ;;  %v323_v32 = vpop.xlane.xlu0 %322 }
 0x120   : > { %709 = vrsqrt.f32 %v984_v26  ;;  %v326_v36 = vmul.f32 0.0625, %v308_v31  ;;  %v317_v37 = vpop.xlane.xlu2 %316  ;;  %v331_v39 = vmul.f32 0.0625, %v323_v32  ;;  %vm410_vm2 = vweird.f32 %v984_v26 }
 0x121   : > { %711 = vrsqrt.f32 %v986_v27  ;;  %v329_v40 = vmul.f32 0.0625, %v317_v37  ;;  %vm370_vm3 = vweird.f32 %v986_v27  ;;  %vm430_vm4 = vweird.f32 %v988_v30 }
 0x122   : > { %713 = vrsqrt.f32 %v988_v30  ;;  %v342_v41 = vsub.f32 %v326_v36, %v334_v35  ;;  %v347_v42 = vsub.f32 %v331_v39, %v339_v38 }
 0x123   : > { %v345_v43 = vsub.f32 %v329_v40, %v337_v34 }
 0x124   : > { %v350_v44 = vmax.f32 %v342_v41, 0.0  ;;  %v355_v45 = vmax.f32 %v347_v42, 0.0  ;;  %v1062_v42 = vld [vmem:[%s1195_s1] ss:$0 sm:$0xff] }
 0x125   : > { %v353_v46 = vmax.f32 %v345_v43, 0.0 }
 0x126   : > { %v999_v48 = vpop.eup %709  ;;  %v1003_v50 = vadd.f32 1e-05, %v350_v44  ;;  %v1009_v54 = vadd.f32 1e-05, %v355_v45 }
 0x127   : > { %v712_v51 = vpop.eup %711  ;;  %v405_v53 = vmul.f32 %v999_v48, %v984_v26  ;;  %v1011_v55 = vadd.f32 1e-05, %v353_v46  ;;  %v305_v60 = vpop.xlane.xlu0 %304  ;;  %vm411_vm5 = vweird.f32 %v999_v48 }
 0x128   : > { %v1013_v56 = vpop.eup %713  ;;  %v365_v59 = vmul.f32 %v712_v51, %v986_v27  ;;  %715 = vrsqrt.f32 %v1003_v50  ;;  %v271_v62 = vpop.xlane.xlu2 %270  ;;  %v325_v7 = vmul.f32 0.0625, %v305_v60  ;;  %vm371_vm6 = vweird.f32 %v712_v51  ;;  %vm1068_vm11 = vmor %vm410_vm2, %vm411_vm5 }
 0x129   : > { %v406_v3 = vmul.f32 %v999_v48, %v405_v53  ;;  %v425_v4 = vmul.f32 %v1013_v56, %v988_v30  ;;  %717 = vrsqrt.f32 %v1009_v54  ;;  %v1034_v8 = vmul.f32 0.0625, %v271_v62  ;;  %v311_v9 = vpop.xlane.xlu1 %310  ;;  %vm372_vm9 = vmor %vm370_vm3, %vm371_vm6  ;;  %v1078_v62 = vld [vmem:[%s1196_s2] ss:$0 sm:$0xff] }
 0x12a   : > { %v366_v0 = vmul.f32 %v712_v51, %v365_v59  ;;  %719 = vrsqrt.f32 %v1011_v55  ;;  %v341_v15 = vsub.f32 %v325_v7, %v333_v18  ;;  %v327_v20 = vmul.f32 0.0625, %v311_v9 }
 0x12b   : > { %v407_v5 = vmul.f32 0.5, %v406_v3  ;;  %v426_v6 = vmul.f32 %v1013_v56, %v425_v4  ;;  %v335_v19 = vmul.f32 %v1034_v8, %v1034_v8  ;;  %vm390_vm7 = vweird.f32 %v1003_v50 }
 0x12c   : > { %v367_v11 = vmul.f32 0.5, %v366_v0  ;;  %vm431_vm8 = vweird.f32 %v1013_v56  ;;  %v349_v38 = vmax.f32 %v341_v15, 0.0  ;;  %vm440_vm2 = vweird.f32 %v1009_v54 }
 0x12d   : > { %v408_v12 = vsub.f32 1.5, %v407_v5  ;;  %v427_v13 = vmul.f32 0.5, %v426_v6  ;;  %v343_v45 = vsub.f32 %v327_v20, %v335_v19  ;;  %vm1089_vm13 = vmor %vm430_vm4, %vm431_vm8  ;;  %vm420_vm4 = vweird.f32 %v1011_v55 }
 0x12e   : > { %v1040_v16 = vpop.eup %715  ;;  %v368_v17 = vsub.f32 1.5, %v367_v11  ;;  %v1073_v44 = vadd.f32 1e-05, %v349_v38 }
 0x12f   : > { %v1044_v23 = vpop.eup %717  ;;  %v409_v31 = vmul.f32 %v999_v48, %v408_v12  ;;  %v428_v32 = vsub.f32 1.5, %v427_v13  ;;  %v385_v34 = vmul.f32 %v1040_v16, %v1003_v50  ;;  %vm391_vm10 = vweird.f32 %v1040_v16 }
 0x130   : > { %v720_v35 = vpop.eup %719  ;;  %v369_v36 = vmul.f32 %v712_v51, %v368_v17  ;;  %v435_v37 = vmul.f32 %v1044_v23, %v1009_v54  ;;  %vm441_vm12 = vweird.f32 %v1044_v23  ;;  %721 = vrsqrt.f32 %v1073_v44  ;;  %vm392_vm15 = vmor %vm390_vm7, %vm391_vm10 }
 0x131   : > { %v429_v39 = vmul.f32 %v1013_v56, %v428_v32  ;;  %v386_v40 = vmul.f32 %v1040_v16, %v385_v34  ;;  %v415_v41 = vmul.f32 %v720_v35, %v1011_v55  ;;  %v413_v26 = vsel %vm1068_vm11, %v999_v48, %v409_v31  ;;  %vm442_vm3 = vmor %vm440_vm2, %vm441_vm12 }
 0x132   : > { %v436_v43 = vmul.f32 %v1044_v23, %v435_v37  ;;  %v373_v46 = vsel %vm372_vm9, %v712_v51, %v369_v36  ;;  %v351_v4 = vmax.f32 %v343_v45, 0.0  ;;  %v458_v48 = vmul.f32 %v450_v49, %v413_v26 }
 0x133   : > { %v387_v53 = vmul.f32 0.5, %v386_v40  ;;  %v416_v59 = vmul.f32 %v720_v35, %v415_v41  ;;  %v454_v60 = vmul.f32 %v446_v57, %v373_v46  ;;  %vm421_vm14 = vweird.f32 %v720_v35 }
 0x134   : > { %v437_v3 = vmul.f32 0.5, %v436_v43  ;;  %v359_v6 = vadd.f32 1e-05, %v351_v4  ;;  %v433_v7 = vsel %vm1089_vm13, %v1013_v56, %v429_v39  ;;  %v469_v12 = vmul.f32 %v1062_v42, %v458_v48  ;;  %vm422_vm5 = vmor %vm420_vm4, %vm421_vm14 }
 0x135   : > { %v388_v57 = vsub.f32 1.5, %v387_v53  ;;  %v417_v18 = vmul.f32 0.5, %v416_v59  ;;  %v465_v0 = vmul.f32 %v1062_v42, %v454_v60  ;;  %v460_v63 = vmul.f32 %v452_v52, %v433_v7 }
 0x136   : > { %v438_v5 = vsub.f32 1.5, %v437_v3  ;;  %723 = vrsqrt.f32 %v359_v6  ;;  %v480_v50 = vadd.f32 %v1078_v62, %v469_v12  ;;  %v722_v13 = vpop.eup %721  ;;  %v451_v54 = vsub.f32 %v888_v10, %v980_v24 }
 0x137   : > { %v389_v30 = vmul.f32 %v1040_v16, %v388_v57  ;;  %v418_v9 = vsub.f32 1.5, %v417_v18  ;;  %v476_v11 = vadd.f32 %v1078_v62, %v465_v0  ;;  %v471_v22 = vmul.f32 %v1062_v42, %v460_v63 }
 0x138   : > { %v439_v14 = vmul.f32 %v1044_v23, %v438_v5  ;;  %v375_v55 = vmul.f32 %v722_v13, %v1073_v44  ;;  %649 = vmatmul.msk.f32.vlgmr.msra.gmra.mxu2 %vm259_vm1, %v480_v50  ;;  %vm381_vm6 = vweird.f32 %v722_v13  ;;  %vm380_vm7 = vweird.f32 %v1073_v44 }
 0x139   : > { %v419_v49 = vmul.f32 %v720_v35, %v418_v9  ;;  %645 = vmatmul.msk.f32.vlgmr.msra.gmra.mxu0 %vm259_vm1, %v476_v11  ;;  %v393_v56 = vsel %vm392_vm15, %v1040_v16, %v389_v30  ;;  %v482_v10 = vadd.f32 %v1078_v62, %v471_v22  ;;  %v447_v36 = vsub.f32 %v922_v33, %v1018_v58  ;;  %vm382_vm8 = vmor %vm380_vm7, %vm381_vm6 }
 0x13a   : > { %v456_v1 = vmul.f32 %v448_v2, %v393_v56  ;;  %v443_v52 = vsel %vm442_vm3, %v1044_v23, %v439_v14  ;;  %v376_v19 = vmul.f32 %v722_v13, %v375_v55  ;;  %vm400_vm10 = vweird.f32 %v359_v6 }
 0x13b   : > { %v423_v15 = vsel %vm422_vm5, %v720_v35, %v419_v49  ;;  %v461_v16 = vmul.f32 %v453_v61, %v443_v52  ;;  %651 = vmatmul.msk.f32.vlgmr.msra.gmra.mxu3 %vm259_vm1, %v482_v10  ;;  %v449_v41 = vsub.f32 %v945_v47, %v1034_v8 }
 0x13c   : > { %v467_v24 = vmul.f32 %v1062_v42, %v456_v1  ;;  %v459_v17 = vmul.f32 %v451_v54, %v423_v15  ;;  %v724_v20 = vpop.eup %723  ;;  %v377_v23 = vmul.f32 0.5, %v376_v19 }
 0x13d   : > { %v472_v2 = vmul.f32 %v1062_v42, %v461_v16  ;;  %v395_v31 = vmul.f32 %v724_v20, %v359_v6  ;;  %vm401_vm9 = vweird.f32 %v724_v20 }
 0x13e   : > { %v478_v28 = vadd.f32 %v1078_v62, %v467_v24  ;;  %v470_v25 = vmul.f32 %v1062_v42, %v459_v17  ;;  %v378_v21 = vsub.f32 1.5, %v377_v23  ;;  %vm402_vm11 = vmor %vm400_vm10, %vm401_vm9 }
 0x13f   : > { %v396_v61 = vmul.f32 %v724_v20, %v395_v31  ;;  %v483_v32 = vadd.f32 %v1078_v62, %v472_v2 }
 0x140   : > { %647 = vmatmul.msk.f32.vlgmr.msra.gmra.mxu1 %vm259_vm1, %v478_v28  ;;  %v481_v29 = vadd.f32 %v1078_v62, %v470_v25  ;;  %v379_v34 = vmul.f32 %v722_v13, %v378_v21 }
 0x141   : > { %v397_v35 = vmul.f32 0.5, %v396_v61 }
 0x142   : > { %650 = vmatmul.msk.f32.gmra.mxu2 %vm259_vm1, %v481_v29  ;;  %v383_v38 = vsel %vm382_vm8, %v722_v13, %v379_v34 }
 0x143   : > { %v398_v37 = vsub.f32 1.5, %v397_v35  ;;  %652 = vmatmul.msk.f32.gmra.mxu3 %vm259_vm1, %v483_v32  ;;  %v455_v39 = vmul.f32 %v447_v36, %v383_v38 }
 0x145   : > { %v399_v40 = vmul.f32 %v724_v20, %v398_v37  ;;  %v466_v27 = vmul.f32 %v1062_v42, %v455_v39 }
 0x147   : > { %v403_v43 = vsel %vm402_vm11, %v724_v20, %v399_v40  ;;  %v477_v44 = vadd.f32 %v1078_v62, %v466_v27 }
 0x148   : > { %v457_v33 = vmul.f32 %v449_v41, %v403_v43 }
 0x149   : > { %646 = vmatmul.msk.f32.gmra.mxu0 %vm259_vm1, %v477_v44 }
 0x14a   : > { %v468_v58 = vmul.f32 %v1062_v42, %v457_v33 }
 0x14c   : > { %v479_v45 = vadd.f32 %v1078_v62, %v468_v58 }
 0x14e   : > { %648 = vmatmul.msk.f32.gmra.mxu1 %vm259_vm1, %v479_v45 }
 0x1b6   : > { %v527_v46 = vpop.f32.mrf.mxu0 }
 0x1b7   : > { %551 = vst.msk [vmem:[%s193_s23] sm:$0xff] %vm250_vm0, %v527_v46 }
 0x1bb   : > { %v539_v8 = vpop.f32.mrf.mxu2 }
 0x1bc   : > { %555 = vst.msk [vmem:[%s193_s23 + $0x20] sm:$0xff] %vm250_vm0, %v539_v8 }
 0x1bd   : > { %v533_v47 = vpop.f32.mrf.mxu1 }
 0x1be   : > { %553 = vst.msk [vmem:[%s193_s23 + $0x10] sm:$0xff] %vm250_vm0, %v533_v47  ;;  %v545_v53 = vpop.f32.mrf.mxu3 }
 0x1bf   : > { %557 = vst.msk [vmem:[%s193_s23 + $0x30] sm:$0xff] %vm250_vm0, %v545_v53 }
 0x1c5   : > { %v542_v42 = vpop.f32.mrf.mxu2 }
 0x1c6   : > { %556 = vst.msk [vmem:[%s193_s23 + $0x28] sm:$0xff] %vm250_vm0, %v542_v42  ;;  %v548_v59 = vpop.f32.mrf.mxu3  ;;  %v530_v60 = vpop.f32.mrf.mxu0 }
 0x1c7   : > { %558 = vst.msk [vmem:[%s193_s23 + $0x38] sm:$0xff] %vm250_vm0, %v548_v59 }
 0x1c8   : > { %552 = vst.msk [vmem:[%s193_s23 + $0x8] sm:$0xff] %vm250_vm0, %v530_v60 }
 0x1cb   : > { %v536_v62 = vpop.f32.mrf.mxu1 }
 0x1cc   : > { %554 = vst.msk [vmem:[%s193_s23 + $0x18] sm:$0xff] %vm250_vm0, %v536_v62 }
 0x1cd   : > { %752 = shalt.err (!%p749_p3)
}
 0x1ce   : > { %s790_s20 = smov 128  }
 0x1cf   : > { %666 = dma.vmem_to_hbm [thread:$0]  (%p854_p5), %s573_s5, 1024, %s575_s7, %s560_s19, %s790_s20, %s790_s20, %s789_s6  }
 0x1d0 PF: > { %p672_p4 = scmp.ge.s32.totalorder %s787_s18, 2  ;;  %s589_s22 = sand.u32 1, %s775_s15  }
 0x1d1   : > { %s590_s23 = scalar_lea.sflag [#allocation3], %s589_s22 }
 0x1d2   : > { %p669_p7 = pnand %p672_p4, %p858_p6 }
 0x1d4   : > { %p670_p8 = pneg %p669_p7 }
 0x1d6   : > { %770 = dma.done.wait (%p670_p8), %s590_s23, 1024  }
 0x1d7   : > { %772 = vsyncadd (%p670_p8), %s590_s23, 4294966272  ;;  %p14_p9 = scmp.ge.s32.totalorder %s841_s21, 4   ;;  %s1205_s15 = smov %s779_s16 }
 0x1d8   : > { %s1206_s16 = smov %s783_s17  ;;  %s1207_s17 = smov %s852_s24 }
 0x1d9   : > { %s1208_s18 = smov %s841_s21  ;;  %16 = sbr.rel (!%p14_p9) target bundleno = 3 (0x3), region = 71 }
 0x1de   :  { %596 = vsyncpa [#allocation3], 1 }
 0x1df   :  { %598 = vsyncpa [#allocation3 + $0x1], 1 }

</bundles_post_ra>
